<compile_context>
chip_gen: v7x
topology: tpu7x:2x2x1
jax: 0.10.0
libtpu: 0.0.40
codegen_flags: <defaults>
</compile_context>

<pallas_src>
import functools

import numpy as np
import jax
import jax.numpy as jnp
from jax import lax
from jax.experimental import pallas as pl
from jax.experimental.pallas import tpu as pltpu


def _round_up(x, m):
    return ((x + m - 1) // m) * m


def _default_vmem_limit():
    """~75% of physical VMEM: ~96 MiB on v5e/v6e (128 MiB), ~48 MiB on v7x."""
    try:
        cap = int(pltpu.get_tpu_info().vmem_capacity_bytes)
    except Exception:
        cap = 64 * 1024 * 1024
    return max(32 * 1024 * 1024, min((cap * 3) // 4, 100 * 1024 * 1024))


_VMEM_LIMIT = _default_vmem_limit()
_TIME_BLOCK = 8          # TS: time steps per grid iteration of the scan


# ----------------------------------------------------------------------------
# Pallas kernels
# ----------------------------------------------------------------------------
def _matmul_bias_kernel(x_ref, w_ref, b_ref, o_ref):
    """o = x @ w + b.  bf16 MXU operands, f32 accumulation + bias."""
    acc = jnp.dot(x_ref[...].astype(jnp.bfloat16), w_ref[...],
                  preferred_element_type=jnp.float32)
    o_ref[...] = (acc + b_ref[...]).astype(o_ref.dtype)


def _dual_matmul_bias_kernel(a_ref, b_ref, wa_ref, wb_ref, bias_ref, o_ref):
    """o = a @ wa + b @ wb + bias (replaces concat([a,b]) @ [wa;wb] + bias)."""
    acc = jnp.dot(a_ref[...].astype(jnp.bfloat16), wa_ref[...],
                  preferred_element_type=jnp.float32)
    acc = acc + jnp.dot(b_ref[...].astype(jnp.bfloat16), wb_ref[...],
                        preferred_element_type=jnp.float32)
    o_ref[...] = (acc + bias_ref[...]).astype(o_ref.dtype)


def _bilstm_scan_kernel(gxf_ref, gxb_ref, whh_ref, len_ref,
                        yf_ref, yb_ref, hf_sc, cf_sc, hb_sc, cb_sc,
                        *, Tp, TS, H):
    """One grid step = TS time steps for BOTH directions.

    gxf_ref: (TS, B, 4H) bf16  x @ W_ih + b, forward slab, times t0..t0+TS-1
    gxb_ref: (TS, B, 4H) bf16  x @ W_ih + b, backward slab, times
                               Tp-(s+1)*TS .. Tp-s*TS-1 (block Tb-1-s)
    whh_ref: (2, H, 4H)  bf16  recurrent weights [fwd, bwd], gate order [i,f,g,o]
    len_ref: (B, 1)      int32 sequence lengths
    yf_ref:  (TS, B, H)  bf16  forward hidden outputs for this time block
    yb_ref:  (TS, B, H)  bf16  backward hidden outputs for this time block
    h*_sc/c*_sc: (B, H)  f32   per-direction recurrent state (persists across grid)
    """
    s = pl.program_id(0)

    @pl.when(s == 0)
    def _():
        hf_sc[...] = jnp.zeros_like(hf_sc)
        cf_sc[...] = jnp.zeros_like(cf_sc)
        hb_sc[...] = jnp.zeros_like(hb_sc)
        cb_sc[...] = jnp.zeros_like(cb_sc)

    # loop-invariant loads, hoisted out of the time loop
    lens = len_ref[...]                       # (B, 1) int32
    whh_f = whh_ref[0]                        # (H, 4H) bf16
    whh_b = whh_ref[1]
    t0 = s * TS

    def cell(gx, gh, h, c, valid):
        """Single LSTM cell step (gate order [i, f, g, o]) with packed-seq mask."""
        gates = gx + gh                                        # (B, 4H) f32
        i_g = jax.nn.sigmoid(gates[:, 0 * H:1 * H])
        f_g = jax.nn.sigmoid(gates[:, 1 * H:2 * H])
        g_g = jnp.tanh(gates[:, 2 * H:3 * H])
        o_g = jax.nn.sigmoid(gates[:, 3 * H:4 * H])
        c_new = f_g * c + i_g * g_g
        h_new = o_g * jnp.tanh(c_new)
        h_out = jnp.where(valid, h_new, h)
        c_out = jnp.where(valid, c_new, c)
        y_out = jnp.where(valid, h_new, 0.0)
        return h_out, c_out, y_out

    def body(j, carry):
        h_f, c_f, h_b, c_b = carry

        # ---- forward direction: time t = t0 + j ----
        t_f = t0 + j
        gx_f = gxf_ref[j].astype(jnp.float32)                  # (B, 4H)
        gh_f = jnp.dot(h_f.astype(jnp.bfloat16), whh_f,
                       preferred_element_type=jnp.float32)
        h_f, c_f, y_f = cell(gx_f, gh_f, h_f, c_f, t_f < lens)
        yf_ref[j] = y_f.astype(yf_ref.dtype)

        # ---- backward direction: time t = Tp - 1 - (t0 + j) ----
        t_b = Tp - 1 - t_f
        gx_b = gxb_ref[TS - 1 - j].astype(jnp.float32)
        gh_b = jnp.dot(h_b.astype(jnp.bfloat16), whh_b,
                       preferred_element_type=jnp.float32)
        h_b, c_b, y_b = cell(gx_b, gh_b, h_b, c_b, t_b < lens)
        yb_ref[TS - 1 - j] = y_b.astype(yb_ref.dtype)

        return (h_f, c_f, h_b, c_b)

    carry0 = (hf_sc[...], cf_sc[...], hb_sc[...], cb_sc[...])
    h_f, c_f, h_b, c_b = lax.fori_loop(0, TS, body, carry0, unroll=True)

    hf_sc[...] = h_f
    cf_sc[...] = c_f
    hb_sc[...] = h_b
    cb_sc[...] = c_b


# ----------------------------------------------------------------------------
# Wrappers
# ----------------------------------------------------------------------------
def matmul_bias(x2d, w_bf16, b_f32, *, out_dtype=jnp.float32, block_m=512):
    """(M, K) @ (K, N) + (1, N), grid over M rows."""
    M, K = x2d.shape
    N = w_bf16.shape[1]
    tm = min(block_m, _round_up(M, 8))
    Mp = _round_up(M, tm)
    if Mp != M:
        x2d = jnp.pad(x2d, ((0, Mp - M), (0, 0)))
    out = pl.pallas_call(
        _matmul_bias_kernel,
        grid=(Mp // tm,),
        in_specs=[pl.BlockSpec((tm, K), lambda i: (i, 0)),
                  pl.BlockSpec((K, N), lambda i: (0, 0)),
                  pl.BlockSpec((1, N), lambda i: (0, 0))],
        out_specs=pl.BlockSpec((tm, N), lambda i: (i, 0)),
        out_shape=jax.ShapeDtypeStruct((Mp, N), out_dtype),
        compiler_params=pltpu.CompilerParams(
            dimension_semantics=("parallel",),
            vmem_limit_bytes=_VMEM_LIMIT),
    )(x2d, w_bf16, b_f32)
    return out[:M] if Mp != M else out


def dual_matmul_bias(a2d, b2d, wa_bf16, wb_bf16, bias_f32, *,
                     out_dtype=jnp.float32, block_m=512):
    """a @ wa + b @ wb + bias -- concat-free replacement for [a|b] @ W + bias."""
    M, Ka = a2d.shape
    Kb = b2d.shape[1]
    N = wa_bf16.shape[1]
    tm = min(block_m, _round_up(M, 8))
    Mp = _round_up(M, tm)
    if Mp != M:
        a2d = jnp.pad(a2d, ((0, Mp - M), (0, 0)))
        b2d = jnp.pad(b2d, ((0, Mp - M), (0, 0)))
    out = pl.pallas_call(
        _dual_matmul_bias_kernel,
        grid=(Mp // tm,),
        in_specs=[pl.BlockSpec((tm, Ka), lambda i: (i, 0)),
                  pl.BlockSpec((tm, Kb), lambda i: (i, 0)),
                  pl.BlockSpec((Ka, N), lambda i: (0, 0)),
                  pl.BlockSpec((Kb, N), lambda i: (0, 0)),
                  pl.BlockSpec((1, N), lambda i: (0, 0))],
        out_specs=pl.BlockSpec((tm, N), lambda i: (i, 0)),
        out_shape=jax.ShapeDtypeStruct((Mp, N), out_dtype),
        compiler_params=pltpu.CompilerParams(
            dimension_semantics=("parallel",),
            vmem_limit_bytes=_VMEM_LIMIT),
    )(a2d, b2d, wa_bf16, wb_bf16, bias_f32)
    return out[:M] if Mp != M else out


def bilstm_layer(gx, len_b1, whh_bf16, Tp, B, H, TS):
    """gx: (Tp, B, 8H) bf16, columns = [fwd 4H slab | bwd 4H slab].

    Returns (yf, yb), each (Tp, B, H) bf16.  Requires 4H % 128 == 0
    (H multiple of 32) so each direction's slab is a lane-aligned block.
    """
    assert Tp % TS == 0 and (4 * H) % 128 == 0
    Tb = Tp // TS
    kernel = functools.partial(_bilstm_scan_kernel, Tp=Tp, TS=TS, H=H)
    yf, yb = pl.pallas_call(
        kernel,
        grid=(Tb,),
        in_specs=[
            # same gx array twice; each direction DMAs only its own 4H slab
            pl.BlockSpec((TS, B, 4 * H), lambda s: (s, 0, 0)),            # fwd
            pl.BlockSpec((TS, B, 4 * H), lambda s: (Tb - 1 - s, 0, 1)),   # bwd
            pl.BlockSpec((2, H, 4 * H), lambda s: (0, 0, 0)),
            pl.BlockSpec((B, 1), lambda s: (0, 0)),
        ],
        out_specs=(
            pl.BlockSpec((TS, B, H), lambda s: (s, 0, 0)),
            pl.BlockSpec((TS, B, H), lambda s: (Tb - 1 - s, 0, 0)),
        ),
        out_shape=(jax.ShapeDtypeStruct((Tp, B, H), jnp.bfloat16),
                   jax.ShapeDtypeStruct((Tp, B, H), jnp.bfloat16)),
        scratch_shapes=[pltpu.VMEM((B, H), jnp.float32)] * 4,
        compiler_params=pltpu.CompilerParams(
            dimension_semantics=("arbitrary",),
            vmem_limit_bytes=_VMEM_LIMIT),
    )(gx, gx, whh_bf16, len_b1)
    return yf, yb


# ----------------------------------------------------------------------------
# Parameters (PyTorch-style init; gate order [i, f, g, o] along each 4H slab)
# ----------------------------------------------------------------------------
def init_params(key, input_dim, hidden_dim, output_dim, num_layers):
    params = {}
    H = hidden_dim
    bound = 1.0 / float(np.sqrt(H))
    keys = jax.random.split(key, num_layers * 8 + 2)
    ki = 0

    def u(shape, b):
        nonlocal ki
        k = keys[ki]
        ki += 1
        return jax.random.uniform(k, shape, jnp.float32, -b, b)

    for layer in range(num_layers):
        d_in = input_dim if layer == 0 else 2 * H
        wih_dirs, whh_dirs, b_dirs = [], [], []
        for _ in range(2):                      # fwd, bwd
            wih_dirs.append(u((d_in, 4 * H), bound))
            whh_dirs.append(u((H, 4 * H), bound))
            b_dirs.append(u((1, 4 * H), bound) + u((1, 4 * H), bound))  # b_ih+b_hh
        wih = jnp.concatenate(wih_dirs, axis=1)      # (d_in, 8H) = [fwd | bwd]
        whh = jnp.stack(whh_dirs, axis=0)            # (2, H, 4H)
        bias = jnp.concatenate(b_dirs, axis=1)       # (1, 8H)
        params[f"l{layer}"] = (wih, whh, bias)

    # FC head, zero-padded to a lane-dense 128-wide output
    n_pad = _round_up(output_dim, 128)
    fc_bound = 1.0 / float(np.sqrt(2 * H))
    fc_w = u((2 * H, output_dim), fc_bound)
    fc_b = u((1, output_dim), fc_bound)
    params["fc_w"] = jnp.pad(fc_w, ((0, 0), (0, n_pad - output_dim)))
    params["fc_b"] = jnp.pad(fc_b, ((0, 0), (0, n_pad - output_dim)))
    return params


# ----------------------------------------------------------------------------
# Forward pass
# ----------------------------------------------------------------------------
def bidirectional_lstm_forward(x, lengths, params, hidden_dim, num_layers,
                               output_dim, time_block=_TIME_BLOCK):
    """x: (B, T, input_dim) batch-first.  lengths: python list / np array.

    Returns (B, max(lengths), output_dim), matching
    pad_packed_sequence(batch_first=True) followed by the Linear head.
    """
    B, T, d_in = x.shape
    H = hidden_dim
    lengths_np = np.asarray(lengths)
    t_out = int(lengths_np.max())
    len_b1 = jnp.asarray(lengths_np, jnp.int32).reshape(B, 1)

    TS = time_block
    Tp = _round_up(T, TS)
    xT = jnp.transpose(x, (1, 0, 2)).astype(jnp.float32)        # (T, B, Din)
    if Tp != T:
        xT = jnp.pad(xT, ((0, Tp - T), (0, 0), (0, 0)))         # masked steps

    yf = yb = None
    for layer in range(num_layers):
        wih, whh, bias = params[f"l{layer}"]
        if layer == 0:
            gx = matmul_bias(xT.reshape(Tp * B, d_in),
                             wih.astype(jnp.bfloat16), bias,
                             out_dtype=jnp.bfloat16)
        else:
            # concat-free: [yf | yb] @ wih == yf @ wih[:H] + yb @ wih[H:]
            gx = dual_matmul_bias(yf.reshape(Tp * B, H), yb.reshape(Tp * B, H),
                                  wih[:H].astype(jnp.bfloat16),
                                  wih[H:].astype(jnp.bfloat16),
                                  bias, out_dtype=jnp.bfloat16)
        gx = gx.reshape(Tp, B, 8 * H)
        yf, yb = bilstm_layer(gx, len_b1, whh.astype(jnp.bfloat16),
                              Tp, B, H, TS)
        # inter-layer LSTM dropout: identity in eval mode

    # FC head (dropout before it: identity in eval mode); lane-dense padded N.
    fc_w, fc_b = params["fc_w"], params["fc_b"]
    flat_f = yf[:t_out].reshape(t_out * B, H)
    flat_b = yb[:t_out].reshape(t_out * B, H)
    y = dual_matmul_bias(flat_f, flat_b,
                         fc_w[:H].astype(jnp.bfloat16),
                         fc_w[H:].astype(jnp.bfloat16),
                         fc_b, out_dtype=jnp.float32)
    y = y.reshape(t_out, B, -1)[:, :, :output_dim]
    return jnp.transpose(y, (1, 0, 2))                           # (B, t_out, Dout)


# ----------------------------------------------------------------------------
# Pure-JAX reference (f32) for a numerical sanity check
# ----------------------------------------------------------------------------
def _reference_forward(x, lengths, params, H, num_layers, output_dim):
    B, T, _ = x.shape
    lengths_np = np.asarray(lengths)

    def lstm_dir(inp, wih, whh, b, reverse):
        h = jnp.zeros((B, H), jnp.float32)
        c = jnp.zeros((B, H), jnp.float32)
        ys = [None] * inp.shape[0]
        order = range(inp.shape[0] - 1, -1, -1) if reverse else range(inp.shape[0])
        for t in order:
            gates = inp[t] @ wih + h @ whh + b
            i = jax.nn.sigmoid(gates[:, 0 * H:1 * H])
            f = jax.nn.sigmoid(gates[:, 1 * H:2 * H])
            g = jnp.tanh(gates[:, 2 * H:3 * H])
            o = jax.nn.sigmoid(gates[:, 3 * H:4 * H])
            c_new = f * c + i * g
            h_new = o * jnp.tanh(c_new)
            valid = jnp.asarray((t < lengths_np).reshape(B, 1))
            h = jnp.where(valid, h_new, h)
            c = jnp.where(valid, c_new, c)
            ys[t] = jnp.where(valid, h_new, 0.0)
        return jnp.stack(ys, 0)

    seq = jnp.transpose(x, (1, 0, 2)).astype(jnp.float32)
    for layer in range(num_layers):
        wih, whh, bias = params[f"l{layer}"]
        yf = lstm_dir(seq, wih[:, :4 * H], whh[0], bias[:, :4 * H], False)
        yb = lstm_dir(seq, wih[:, 4 * H:], whh[1], bias[:, 4 * H:], True)
        seq = jnp.concatenate([yf, yb], axis=-1)
    t_out = int(lengths_np.max())
    out = seq[:t_out] @ params["fc_w"] + params["fc_b"]
    out = out[:, :, :output_dim]
    return jnp.transpose(out, (1, 0, 2))


# ----------------------------------------------------------------------------
if __name__ == "__main__":
    INPUT_DIM = 16
    HIDDEN_DIM = 32
    OUTPUT_DIM = 8
    NUM_LAYERS = 2
    B, T = 2, 8
    lengths = [8, 5]          # max(lengths) == T so padded output width == T

    key = jax.random.PRNGKey(0)
    k_x, k_p = jax.random.split(key)
    x = jax.random.normal(k_x, (B, T, INPUT_DIM), jnp.float32)
    params = init_params(k_p, INPUT_DIM, HIDDEN_DIM, OUTPUT_DIM, NUM_LAYERS)

    out = bidirectional_lstm_forward(x, lengths, params,
                                     HIDDEN_DIM, NUM_LAYERS, OUTPUT_DIM)
    out = jax.block_until_ready(out)
    assert out.shape == (B, max(lengths), OUTPUT_DIM)
    assert bool(jnp.all(jnp.isfinite(out)))

    ref = _reference_forward(x, lengths, params, HIDDEN_DIM, NUM_LAYERS,
                             OUTPUT_DIM)
    np.testing.assert_allclose(np.asarray(out), np.asarray(ref),
                               atol=1e-1, rtol=1e-1)
    print("KERNEL_OK")
</pallas_src>

<mosaic_0001>
module attributes {stable_mosaic.version = 11 : i64} {
  func.func @_matmul_bias_kernel(%arg0: i32, %arg1: memref<16x16xf32, #tpu.memory_space<vmem>>, %arg2: memref<16x256xbf16, #tpu.memory_space<vmem>>, %arg3: memref<1x256xf32, #tpu.memory_space<vmem>>, %arg4: memref<16x256xbf16, #tpu.memory_space<vmem>>) attributes {dimension_semantics = [#tpu.dimension_semantics<parallel>], iteration_bounds = array<i64: 1>, scalar_prefetch = 0 : i64, scratch_operands = 0 : i64, tpu.core_type = #tpu.core_type<tc>, window_params = [{transform_indices = @transform_0, window_bounds = array<i64: 16, 16>}, {pipeline_mode = #tpu.pipeline_mode<synchronous>, transform_indices = @transform_1, window_bounds = array<i64: 16, 256>}, {pipeline_mode = #tpu.pipeline_mode<synchronous>, transform_indices = @transform_2, window_bounds = array<i64: 1, 256>}, {transform_indices = @transform_3, window_bounds = array<i64: 16, 256>}]} {
    %c0 = arith.constant 0 : index
    %c0_0 = arith.constant 0 : index
    %0 = vector.load %arg1[%c0, %c0_0] : memref<16x16xf32, #tpu.memory_space<vmem>>, vector<16x16xf32>
    %1 = arith.truncf %0 : vector<16x16xf32> to vector<16x16xbf16>
    %c0_1 = arith.constant 0 : index
    %c0_2 = arith.constant 0 : index
    %2 = vector.load %arg2[%c0_1, %c0_2] : memref<16x256xbf16, #tpu.memory_space<vmem>>, vector<16x256xbf16>
    %cst = arith.constant dense<0.000000e+00> : vector<16x256xf32>
    %3 = tpu.matmul %1, %2, %cst {dimension_numbers = #tpu.dot_dimension_numbers<[1], [0], [0], [1], [0, 0, 1, 1], [], []>} : vector<16x16xbf16>, vector<16x256xbf16>, vector<16x256xf32> -> vector<16x256xf32>
    %c0_3 = arith.constant 0 : index
    %c0_4 = arith.constant 0 : index
    %4 = vector.load %arg3[%c0_3, %c0_4] : memref<1x256xf32, #tpu.memory_space<vmem>>, vector<1x256xf32>
    %5 = vector.broadcast %4 : vector<1x256xf32> to vector<16x256xf32>
    %6 = arith.addf %3, %5 : vector<16x256xf32>
    %7 = arith.truncf %6 : vector<16x256xf32> to vector<16x256xbf16>
    %c0_5 = arith.constant 0 : index
    %c0_6 = arith.constant 0 : index
    %8 = vector.load %arg4[%c0_5, %c0_6] : memref<16x256xbf16, #tpu.memory_space<vmem>>, vector<16x256xbf16>
    tpu.vector_store %arg4[%c0_5, %c0_6], %7 {strides = array<i32>} : memref<16x256xbf16, #tpu.memory_space<vmem>>, vector<16x256xbf16>,
    return
  }
  func.func @transform_0(%arg0: i32) -> (i32, i32) {
    %c0_i32 = arith.constant 0 : i32
    %c0_i32_0 = arith.constant 0 : i32
    return %arg0, %c0_i32 : i32, i32
  }
  func.func @transform_1(%arg0: i32) -> (i32, i32) {
    %c0_i32 = arith.constant 0 : i32
    %c0_i32_0 = arith.constant 0 : i32
    %c0_i32_1 = arith.constant 0 : i32
    return %c0_i32, %c0_i32_0 : i32, i32
  }
  func.func @transform_2(%arg0: i32) -> (i32, i32) {
    %c0_i32 = arith.constant 0 : i32
    %c0_i32_0 = arith.constant 0 : i32
    %c0_i32_1 = arith.constant 0 : i32
    return %c0_i32, %c0_i32_0 : i32, i32
  }
  func.func @transform_3(%arg0: i32) -> (i32, i32) {
    %c0_i32 = arith.constant 0 : i32
    %c0_i32_0 = arith.constant 0 : i32
    return %arg0, %c0_i32 : i32, i32
  }
}

</mosaic_0001>

<bundles_post_ra>
// kernel: tpu_custom_call.1
= control target key start
LH: loop header
LB: loop body
LE: loop exit
PB: predicated region body
PF: predicated region fallthrough
CT: control target
= control target key end

     0   :  { %8 = vsyncpa [#allocation3], 0  ;;  %s312_s0 = inlined_call_operand.hbm [shape: f32[16,16], index: 0, kind: input, shape index: {}]   ;;  %s313_s1 = inlined_call_operand.hbm [shape: bf16[16,256], index: 1, kind: input, shape index: {}]   ;;  %s314_s2 = inlined_call_operand.vmem [shape: f32[1,256], index: 2, kind: input, shape index: {}]   ;;  %s315_s3 = inlined_call_operand.hbm [shape: bf16[16,256], index: 3, kind: output, shape index: {}]  }
   0x1   :  { %9 = vsyncpa [#allocation6], 0 }
   0x2   :  { %10 = vsyncpa [#allocation4], 0  ;;  %s238_s12 = smov [#allocation2]   ;;  %s166_s16 = scalar_lea.hbm %s312_s0, 256 }
   0x3   :  { %s16_s13 = sshll.u32 %s238_s12, 4  ;;  %p167_p0 = scmp.ne.s32.totalorder %s312_s0, %s166_s16  ;;  %s17_s13 = int_to_ptr.vmem [resolvable:$true] %s16_s13 }
   0x4   :  { %p170_p1 = scmp.lt.u32.totalorder %s166_s16, %s312_s0 }
   0x6   :  { %p172_p2 = pnand %p170_p1, %p167_p0 }
   0x8   :  { %175 = shalt.err (!%p172_p2)
}
   0x9   :  { %s176_s21 = scalar_lea.vmem %s17_s13, 256  ;;  %p181_p4 = scmp.lt.s32.totalorder %s17_s13, %s17_s13 }
   0xa   :  { %p177_p3 = scmp.ne.s32.totalorder %s17_s13, %s176_s21  ;;  %p182_p5 = scmp.lt.s32.totalorder %s176_s21, %s176_s21 }
   0xc   :  { %p183_p6 = por %p182_p5, %p181_p4 }
   0xe   :  { %p184_p7 = pnand %p183_p6, %p177_p3 }
  0x10   :  { %187 = shalt.err (!%p184_p7)
}
  0x11   :  { %s239_s22 = smov 128   ;;  %s240_s23 = smov 8  }
  0x12   :  { %22 = dma.hbm_to_vmem [thread:$0]  %s312_s0, 256, %s17_s13, [#allocation3], %s239_s22, %s239_s22, %s240_s23  }
  0x13   :  { %s241_s26 = smov [#allocation5]   ;;  %s188_s30 = scalar_lea.hbm %s313_s1, 256 }
  0x14   :  { %s28_s27 = sshll.u32 %s241_s26, 4  ;;  %p189_p8 = scmp.ne.s32.totalorder %s313_s1, %s188_s30  ;;  %s29_s27 = int_to_ptr.vmem [resolvable:$true] %s28_s27 }
  0x15   :  { %p192_p9 = scmp.lt.u32.totalorder %s188_s30, %s313_s1 }
  0x17   :  { %p194_p10 = pnand %p192_p9, %p189_p8 }
  0x19   :  { %197 = shalt.err (!%p194_p10)
}
  0x1a   :  { %s198_s8 = scalar_lea.vmem %s29_s27, 256  ;;  %p203_p12 = scmp.lt.s32.totalorder %s29_s27, %s29_s27 }
  0x1b   :  { %p199_p11 = scmp.ne.s32.totalorder %s29_s27, %s198_s8  ;;  %p204_p13 = scmp.lt.s32.totalorder %s198_s8, %s198_s8 }
  0x1d   :  { %p205_p0 = por %p204_p13, %p203_p12 }
  0x1f   :  { %p206_p1 = pnand %p205_p0, %p199_p11 }
  0x21   :  { %209 = shalt.err (!%p206_p1)
}
  0x22   :  { %34 = dma.hbm_to_vmem [thread:$0]  %s313_s1, 256, %s29_s27, [#allocation6], %s239_s22, %s239_s22, %s240_s23  }
  0x23   :  { %232 = dma.done.wait [#allocation3], 256  }
  0x24   :  { %233 = vsyncadd [#allocation3], 4294967040 }
  0x25   :  { %234 = dma.done.wait [#allocation6], 256  }
  0x26   :  { %235 = vsyncadd [#allocation6], 4294967040  ;;  %v242_v0 = vmov 0   ;;  %v163_v1 = vld [vmem:[#allocation5 + $0x4] ss:$8 sps:$4 sm:$0xff]   ;;  %v44_v3 = vld [vmem:[#allocation2] sm:$0xff]  ;;  %v51_v6 = vlaneseq }
  0x27   :  { %107 = vmatprep.mubr.bf16.mxu0 %v242_v0  ;;  %v165_v2 = vld [vmem:[#allocation5] ss:$8 sps:$4 sm:$0xff]   ;;  %v45_v4 = vld [vmem:[#allocation2 + $0x8] sm:$0xff]  ;;  %75 = vmatprep.subr.bf16.mxu0 %v163_v1  ;;  %vm71_vm0 = vcmask 130048   ;;  %v49_v9 = vld [vmem:[%s314_s2] sm:$0x3] }
  0x28   :  { %v46_v5 = vpack.c.bf16 %v45_v4, %v44_v3  ;;  %76 = vmatpush1.bf16.msra.mxu0 %v165_v2  ;;  %v52_v7 = vshrl.u32 %v51_v6, 7  ;;  %s243_s11 = smov [#allocation7]  }
  0x29   :  { %s137_s12 = sshll.u32 %s243_s11, 4  ;;  %s138_s12 = int_to_ptr.vmem [resolvable:$true] %s137_s12 }
  0x2a   :  { %v53_v8 = vsub.s32 0, %v52_v7  ;;  %v57_v10 = vsub.s32 1, %v52_v7  ;;  %s210_s13 = scalar_lea.vmem %s138_s12, 256  ;;  %p215_p3 = scmp.lt.s32.totalorder %s138_s12, %s138_s12 }
  0x2b   :  { %152 = vmatmul.mubr.msk.bf16.vlgmr.msra.gmra.mrb[0].mxu0 %vm71_vm0, %v46_v5  ;;  %p211_p2 = scmp.ne.s32.totalorder %s138_s12, %s210_s13  ;;  %p216_p4 = scmp.lt.s32.totalorder %s210_s13, %s210_s13 }
  0x2c   :  { %v54_v11 = vrot.slane %v49_v9, %v53_v8  ;;  %v58_v12 = vrot.slane %v49_v9, %v57_v10 }
  0x2d   :  { %p217_p5 = por %p216_p4, %p215_p3 }
  0x2f   :  { %p218_p6 = pnand %p217_p5, %p211_p2 }
  0xfe   :  { %v109_v13 = vpop.f32.mrb[0].mxu0 }
  0xff   :  { %v110_v14 = vadd.f32 %v109_v13, %v54_v11  ;;  %v111_v15 = vpop.f32.mrb[1].mxu0 }
 0x100   :  { %v112_v16 = vadd.f32 %v111_v15, %v58_v12  ;;  %v113_v17 = vpop.f32.mrb[2].mxu0 }
 0x101   :  { %v114_v18 = vadd.f32 %v113_v17, %v54_v11  ;;  %v115_v19 = vpop.f32.mrb[3].mxu0 }
 0x102   :  { %v155_v20 = vpack.c.bf16 %v112_v16, %v110_v14  ;;  %v116_v21 = vadd.f32 %v115_v19, %v58_v12 }
 0x104   :  { %130 = vst [vmem:[#allocation7] sm:$0xff] %v155_v20  ;;  %v156_v22 = vpack.c.bf16 %v116_v21, %v114_v18 }
 0x106   :  { %131 = vst [vmem:[#allocation7 + $0x8] sm:$0xff] %v156_v22 }
 0x107   :  { %221 = shalt.err (!%p218_p6)
}
 0x108   :  { %s222_s15 = scalar_lea.hbm %s315_s3, 256 }
 0x109   :  { %p223_p7 = scmp.ne.s32.totalorder %s315_s3, %s222_s15  ;;  %p226_p8 = scmp.lt.u32.totalorder %s222_s15, %s315_s3 }
 0x10b   :  { %p228_p9 = pnand %p226_p8, %p223_p7 }
 0x10d   :  { %231 = shalt.err (!%p228_p9)
}
 0x10e   :  { %143 = dma.vmem_to_hbm [thread:$0]  %s138_s12, 256, %s315_s3, [#allocation4], %s239_s22, %s239_s22, %s240_s23  }
 0x10f   :  { %236 = dma.done.wait [#allocation4], 256  }
 0x110   :  { %237 = vsyncadd [#allocation4], 4294967040 }
 0x111   :  { %147 = vsyncpa [#allocation3], 1 }
 0x112   :  { %148 = vsyncpa [#allocation6], 1 }
 0x113   :  { %149 = vsyncpa [#allocation4], 1 }

</bundles_post_ra>
